<compile_context>
chip_gen: v6e
topology: v6e:2x2x1
jax: 0.10.0
libtpu: 0.0.40
codegen_flags: <defaults>
</compile_context>

<pallas_src>
import functools

import jax
import jax.numpy as jnp
import numpy as np
from jax.experimental import pallas as pl
from jax.experimental.pallas import tpu as pltpu

_LANE = 128
_SUBLANE = 8


def _round_up(x, m):
    return ((x + m - 1) // m) * m


def _choose_tiles(num_pos, num, block_budget_bytes=4 * 1024 * 1024):
    """Pick (tile_pos, tile_num) targeting ~block_budget_bytes of f32 VMEM per
    negatives block (double-buffered by the pipeline).  Conservative enough for
    v7x's 64 MiB / 32 MiB-scoped VMEM; v5e/v6e gain nothing from bigger blocks
    since the kernel is purely HBM-bandwidth-bound."""

    def block_bytes(tp, tn):
        # f32; lanes pad to 128 inside VMEM.
        return tp * _round_up(tn, _LANE) * 4

    # Span the whole negatives row in one block when even the minimal sublane
    # tile fits the budget (block lane dim == full array dim is always legal,
    # even if `num` is not a multiple of 128).  Otherwise strip-mine `num`
    # with a reduction grid axis in multiple-of-128 lane chunks.
    if block_bytes(_SUBLANE, num) <= block_budget_bytes:
        tile_num = num
    else:
        tile_num = max((block_budget_bytes // (_SUBLANE * 4)) // _LANE * _LANE, _LANE)
        tile_num = min(tile_num, _round_up(num, _LANE))

    tile_pos = block_budget_bytes // block_bytes(1, tile_num)
    tile_pos = min(max((tile_pos // _SUBLANE) * _SUBLANE, _SUBLANE),
                   _round_up(num_pos, _SUBLANE))

    # v7x megacore: make sure the parallel (positives) axis has >= 2 grid steps
    # whenever it can be split, so both TensorCores get work.
    if pl.cdiv(num_pos, tile_pos) == 1 and num_pos > _SUBLANE:
        tile_pos = _round_up((num_pos + 1) // 2, _SUBLANE)

    return tile_pos, tile_num


def _mrr_kernel(neg_ref, pos_ref, rr_ref, cnt_ref, *, num, tile_num):
    k = pl.program_id(1)

    @pl.when(k == 0)
    def _init():
        cnt_ref[...] = jnp.zeros_like(cnt_ref)

    neg = neg_ref[...]                       # (tile_pos, tile_num) f32
    pos = pos_ref[...]                       # (tile_pos, 1) f32, broadcasts over lanes

    # Mask lanes past the true `num`: the last reduction block may cover a
    # clamped / stale region, so never count it.
    lane = jax.lax.broadcasted_iota(jnp.int32, neg.shape, 1) + k * tile_num
    hit = jnp.logical_and(lane < num, neg > pos)          # VPU compare
    # int32 accumulation: exact for any number of negatives (f32 caps at 2^24).
    cnt_ref[...] += jnp.sum(hit.astype(jnp.int32), axis=1, keepdims=True)  # XLU reduce

    @pl.when(k == pl.num_programs(1) - 1)
    def _finalize():
        # NOTE: exact divide on purpose -- rr must be exactly 1/1, 1/2, ... ;
        # pl.reciprocal(approx=True) would break the tolerance.
        rr_ref[...] = 1.0 / (1.0 + cnt_ref[...].astype(jnp.float32))


def mrr_forward(num, predict_val, num_pos, index):
    # ----- glue: predict_val[argsort(index)] == scatter by the permutation -----
    pv = (
        jnp.zeros_like(predict_val, dtype=jnp.float32)
        .at[index]
        .set(predict_val.astype(jnp.float32))
    )

    pos = pv[:num_pos]                                               # (num_pos,)
    neg = pv[num_pos:num_pos + num_pos * num].reshape(num_pos, num)  # (num_pos, num), NOT transposed/padded

    tile_pos, tile_num = _choose_tiles(num_pos, num)
    grid_pos = pl.cdiv(num_pos, tile_pos)
    grid_k = pl.cdiv(num, tile_num)
    pos_pad = grid_pos * tile_pos

    # Only the tiny positives vector / output get padded (negligible traffic);
    # the big negatives matrix is consumed as-is.
    pos_p = jnp.zeros((pos_pad, 1), dtype=jnp.float32).at[:num_pos, 0].set(pos)

    # TODO(synk): torch.randperm only randomizes tie-breaking of equal scores; here
    # ties are broken optimistically (rank counts strictly-greater negatives), which
    # matches the PyTorch result whenever the scores are tie-free.
    rr = pl.pallas_call(
        functools.partial(_mrr_kernel, num=num, tile_num=tile_num),
        out_shape=jax.ShapeDtypeStruct((pos_pad, 1), jnp.float32),
        grid_spec=pltpu.PrefetchScalarGridSpec(
            num_scalar_prefetch=0,
            grid=(grid_pos, grid_k),
            in_specs=[
                pl.BlockSpec((tile_pos, tile_num), lambda i, k: (i, k)),
                pl.BlockSpec((tile_pos, 1), lambda i, k: (i, 0)),
            ],
            out_specs=pl.BlockSpec((tile_pos, 1), lambda i, k: (i, 0)),
            scratch_shapes=[pltpu.VMEM((tile_pos, 1), jnp.int32)],
        ),
        compiler_params=pltpu.CompilerParams(
            dimension_semantics=("parallel", "arbitrary"),
            vmem_limit_bytes=32 * 1024 * 1024,
        ),
        cost_estimate=pl.CostEstimate(
            flops=int(2 * num_pos * num),
            transcendentals=0,
            bytes_accessed=int(4 * (num_pos * num + 2 * num_pos)),
        ),
    )(neg, pos_p)

    sample_mrr = rr[:num_pos, 0]                 # drop padded rows
    mrr = jnp.sum(sample_mrr) / num_pos          # divide by the TRUE num_pos
    return mrr, sample_mrr


if __name__ == "__main__":
    num = 16        # negatives per positive
    num_pos = 8     # number of positives
    total = num_pos + num_pos * num   # = 136 scores

    key = jax.random.PRNGKey(0)
    k1, k2 = jax.random.split(key)
    predict_val = jax.random.normal(k1, (total,), dtype=jnp.float32)
    index = jax.random.permutation(k2, total).astype(jnp.int32)

    mrr_fn = jax.jit(mrr_forward, static_argnums=(0, 2))
    mrr, sample_mrr = mrr_fn(num, predict_val, num_pos, index)
    mrr = jax.block_until_ready(mrr)
    sample_mrr = jax.block_until_ready(sample_mrr)

    # plain-numpy reference (same deterministic, tie-free semantics as the PyTorch loop)
    pv = np.asarray(predict_val)[np.argsort(np.asarray(index), kind="stable")]
    ref_rr = []
    for i in range(num_pos):
        negs = pv[num_pos + i * num: num_pos + (i + 1) * num]
        rank = 1 + int(np.sum(negs > pv[i]))
        ref_rr.append(1.0 / rank)
    ref_mrr = sum(ref_rr) / num_pos

    assert np.allclose(np.asarray(sample_mrr), np.asarray(ref_rr), atol=1e-6)
    assert np.allclose(float(mrr), ref_mrr, atol=1e-6)

    print("KERNEL_OK")
</pallas_src>

<mosaic_0001>
module attributes {stable_mosaic.version = 11 : i64} {
  func.func @_mrr_kernel(%arg0: i32, %arg1: i32, %arg2: memref<8x16xf32, #tpu.memory_space<vmem>>, %arg3: memref<8x1xf32, #tpu.memory_space<vmem>>, %arg4: memref<8x1xf32, #tpu.memory_space<vmem>>, %arg5: memref<8x1xi32, #tpu.memory_space<vmem>>) attributes {dimension_semantics = [#tpu.dimension_semantics<parallel>, #tpu.dimension_semantics<arbitrary>], iteration_bounds = array<i64: 1, 1>, scalar_prefetch = 0 : i64, scratch_operands = 1 : i64, tpu.core_type = #tpu.core_type<tc>, window_params = [{transform_indices = @transform_0, window_bounds = array<i64: 8, 16>}, {transform_indices = @transform_1, window_bounds = array<i64: 8, 1>}, {transform_indices = @transform_2, window_bounds = array<i64: 8, 1>}]} {
    %c0_i32 = arith.constant 0 : i32
    %0 = arith.cmpi eq, %arg1, %c0_i32 : i32
    %1 = arith.extui %0 : i1 to i32
    %c0_i32_0 = arith.constant 0 : i32
    %2 = arith.cmpi ne, %1, %c0_i32_0 : i32
    scf.if %2 {
      %c0_i32_11 = arith.constant 0 : i32
      %23 = vector.broadcast %c0_i32_11 : i32 to vector<8x1xi32>
      %c0_12 = arith.constant 0 : index
      %c0_13 = arith.constant 0 : index
      %24 = vector.load %arg5[%c0_12, %c0_13] : memref<8x1xi32, #tpu.memory_space<vmem>>, vector<8x1xi32>
      tpu.vector_store %arg5[%c0_12, %c0_13], %23 {strides = array<i32>} : memref<8x1xi32, #tpu.memory_space<vmem>>, vector<8x1xi32>,
    } else {
    }
    %c0 = arith.constant 0 : index
    %c0_1 = arith.constant 0 : index
    %3 = vector.load %arg2[%c0, %c0_1] : memref<8x16xf32, #tpu.memory_space<vmem>>, vector<8x16xf32>
    %c0_2 = arith.constant 0 : index
    %c0_3 = arith.constant 0 : index
    %4 = vector.load %arg3[%c0_2, %c0_3] : memref<8x1xf32, #tpu.memory_space<vmem>>, vector<8x1xf32>
    %5 = tpu.iota {dimensions = array<i32: 1>} : vector<8x16xi32>
    %c16_i32 = arith.constant 16 : i32
    %6 = arith.muli %arg1, %c16_i32 : i32
    %7 = vector.broadcast %6 : i32 to vector<8x16xi32>
    %8 = arith.addi %5, %7 : vector<8x16xi32>
    %c16_i32_4 = arith.constant 16 : i32
    %9 = vector.broadcast %c16_i32_4 : i32 to vector<8x16xi32>
    %10 = arith.cmpi slt, %8, %9 : vector<8x16xi32>
    %11 = vector.broadcast %4 : vector<8x1xf32> to vector<8x16xf32>
    %12 = arith.cmpf ogt, %3, %11 : vector<8x16xf32>
    %13 = arith.andi %10, %12 : vector<8x16xi1>
    %c0_5 = arith.constant 0 : index
    %c0_6 = arith.constant 0 : index
    %14 = vector.load %arg5[%c0_5, %c0_6] : memref<8x1xi32, #tpu.memory_space<vmem>>, vector<8x1xi32>
    %15 = arith.extui %13 : vector<8x16xi1> to vector<8x16xi32>
    %cst = arith.constant dense<0> : vector<8xi32>
    %16 = vector.multi_reduction <add>, %15, %cst [1] : vector<8x16xi32> to vector<8xi32>
    %17 = vector.shape_cast %16 : vector<8xi32> to vector<8x1xi32>
    %18 = arith.addi %14, %17 : vector<8x1xi32>
    %c0_7 = arith.constant 0 : index
    %c0_8 = arith.constant 0 : index
    %19 = vector.load %arg5[%c0_7, %c0_8] : memref<8x1xi32, #tpu.memory_space<vmem>>, vector<8x1xi32>
    tpu.vector_store %arg5[%c0_7, %c0_8], %18 {strides = array<i32>} : memref<8x1xi32, #tpu.memory_space<vmem>>, vector<8x1xi32>,
    %c0_i32_9 = arith.constant 0 : i32
    %20 = arith.cmpi eq, %arg1, %c0_i32_9 : i32
    %21 = arith.extui %20 : i1 to i32
    %c0_i32_10 = arith.constant 0 : i32
    %22 = arith.cmpi ne, %21, %c0_i32_10 : i32
    scf.if %22 {
      %c0_11 = arith.constant 0 : index
      %c0_12 = arith.constant 0 : index
      %23 = vector.load %arg5[%c0_11, %c0_12] : memref<8x1xi32, #tpu.memory_space<vmem>>, vector<8x1xi32>
      %24 = arith.sitofp %23 : vector<8x1xi32> to vector<8x1xf32>
      %cst_13 = arith.constant 1.000000e+00 : f32
      %25 = vector.broadcast %cst_13 : f32 to vector<8x1xf32>
      %26 = arith.addf %25, %24 : vector<8x1xf32>
      %cst_14 = arith.constant 1.000000e+00 : f32
      %27 = vector.broadcast %cst_14 : f32 to vector<8x1xf32>
      %28 = arith.divf %27, %26 : vector<8x1xf32>
      %c0_15 = arith.constant 0 : index
      %c0_16 = arith.constant 0 : index
      %29 = vector.load %arg4[%c0_15, %c0_16] : memref<8x1xf32, #tpu.memory_space<vmem>>, vector<8x1xf32>
      tpu.vector_store %arg4[%c0_15, %c0_16], %28 {strides = array<i32>} : memref<8x1xf32, #tpu.memory_space<vmem>>, vector<8x1xf32>,
    } else {
    }
    return
  }
  func.func @transform_0(%arg0: i32, %arg1: i32) -> (i32, i32) {
    %c0_i32 = arith.constant 0 : i32
    return %arg0, %arg1 : i32, i32
  }
  func.func @transform_1(%arg0: i32, %arg1: i32) -> (i32, i32) {
    %c0_i32 = arith.constant 0 : i32
    %c0_i32_0 = arith.constant 0 : i32
    return %arg0, %c0_i32 : i32, i32
  }
  func.func @transform_2(%arg0: i32, %arg1: i32) -> (i32, i32) {
    %c0_i32 = arith.constant 0 : i32
    %c0_i32_0 = arith.constant 0 : i32
    return %arg0, %c0_i32 : i32, i32
  }
}

</mosaic_0001>

<bundles_post_ra>
// kernel: mrr_forward.1
= control target key start
LH: loop header
LB: loop body
LE: loop exit
PB: predicated region body
PF: predicated region fallthrough
CT: control target
= control target key end

     0   :  { %vm15_vm0 = vcmask 7168   ;;  %v68_v0 = vmov 0   ;;  %v19_v2 = vlaneseq  ;;  %vm34_vm3 = vcmask 130048   ;;  %s96_s1 = inlined_call_operand.vmem [shape: f32[8,1], index: 1, kind: input, shape index: {}]   ;;  %s97_s0 = inlined_call_operand.vmem [shape: f32[8,16], index: 0, kind: input, shape index: {}]   ;;  %s98_s2 = inlined_call_operand.vmem [shape: f32[8,1], index: 2, kind: output, shape index: {}]  }
   0x1   :  { %65 = vset.pattern.permute.xlu0 %v68_v0  ;;  %16 = vst.msk [vmem:[#allocation2] sm:$0xff] %vm15_vm0, %v68_v0  ;;  %v18_v1 = vld [vmem:[%s96_s1] sm:$0xff] }
   0x2   :  { %27 = vperm.xlu0 %65, %v18_v1   ;;  %v20_v3 = vand.u32 127, %v19_v2  ;;  %v17_v4 = vld [vmem:[%s97_s0] sm:$0xff] }
   0x4   :  { %vm24_vm1 = vcmp.lt.s32.totalorder %v20_v3, 16 }
   0x8   :  { %v32_v17 = vld [vmem:[#allocation2] sm:$0xff] }
  0x7d   :  { %v28_v5 = vpop.permute.xlu0 %27 }
  0x7e   :  { %vm30_vm2 = vcmp.gt.f32.partialorder %v17_v4, %v28_v5 }
  0x7f   :  { %vm31_vm4 = vmand %vm24_vm1, %vm30_vm2 }
  0x80   :  { %v33_v6 = vsel %vm31_vm4, 1, %v68_v0 }
  0x81   :  { %v35_v7 = vsel %vm34_vm3, %v33_v6, 0 }
  0x82   :  { %v37_v8 = vshrl.u32 %v35_v7, 16  ;;  %v36_v9 = vand.u32 65535, %v35_v7 }
  0x84   :  { %v39_v10 = vcvt.s32.f32 %v37_v8  ;;  %v38_v11 = vcvt.s32.f32 %v36_v9 }
  0x86   :  { %42 = vadd.xlane.f32.xlu0 %v39_v10  ;;  %40 = vadd.xlane.f32.xlu1 %v38_v11 }
 0x10f   :  { %v43_v12 = vpop.xlane.xlu0 %42  ;;  %v41_v13 = vpop.xlane.xlu1 %40 }
 0x110   :  { %v45_v14 = vcvt.f32.s32 %v43_v12  ;;  %v44_v16 = vcvt.f32.s32 %v41_v13 }
 0x112   :  { %v46_v15 = vshll.u32 %v45_v14, 16 }
 0x114   :  { %v47_v18 = vadd.s32 %v46_v15, %v44_v16 }
 0x116   :  { %v48_v19 = vadd.s32 %v47_v18, %v32_v17 }
 0x118   :  { %50 = vst.msk [vmem:[#allocation2] sm:$0xff] %vm15_vm0, %v48_v19 }
 0x11f   :  { %v54_v20 = vld [vmem:[#allocation2] sm:$0xff] }
 0x120   :  { %v55_v21 = vcvt.s32.f32 %v54_v20 }
 0x122   :  { %v56_v22 = vadd.f32 1.0, %v55_v21 }
 0x124   :  { %66 = vrcp.f32 %v56_v22 }
 0x131   :  { %v67_v23 = vpop.eup %66 }
 0x132   :  { %59 = vst.msk [vmem:[%s98_s2] sm:$0xff] %vm15_vm0, %v67_v23 }

</bundles_post_ra>
